<compile_context>
chip_gen: v5e
topology: v5e:2x2
jax: 0.10.0
libtpu: 0.0.40
codegen_flags: <defaults>
</compile_context>

<pallas_src>
import functools

import jax
import jax.numpy as jnp
from jax.experimental import pallas as pl
from jax.experimental.pallas import tpu as pltpu


# ----------------------------------------------------------------------------
# Kernel: one grid step of  out = maybe_relu(A @ M + b).
#   grid = (row_tiles, k_tiles); k (contraction over A's columns) is innermost
#   and "arbitrary".  acc (f32 VMEM scratch) accumulates sum_k A[i,k] @ M[k].
# ----------------------------------------------------------------------------
def adj_propagate_kernel(a_ref, m_ref, b_ref, out_ref, acc_ref, *, apply_relu):
    k = pl.program_id(1)

    @pl.when(k == 0)
    def _():
        acc_ref[...] = jnp.zeros_like(acc_ref)

    # (TM, TK) bf16 @ (TK, W) bf16 -> f32 accumulate on the MXU.
    acc_ref[...] += jnp.dot(a_ref[...], m_ref[...],
                            preferred_element_type=jnp.float32)

    @pl.when(k == pl.num_programs(1) - 1)
    def _():
        y = acc_ref[...] + b_ref[...]        # f32 epilogue (v5e-safe)
        if apply_relu:
            y = jnp.maximum(y, 0.0)
        out_ref[...] = y.astype(out_ref.dtype)


# ----------------------------------------------------------------------------
# Tiling / VMEM helpers.
# ----------------------------------------------------------------------------
def _round_up(x, m):
    return (x + m - 1) // m * m


@functools.lru_cache(maxsize=None)
def _vmem_limit_bytes():
    """Generation-aware VMEM budget (v7x: 64 MiB/TC, v5e/v6e: 128 MiB)."""
    try:
        cap = int(pltpu.get_tpu_info().vmem_capacity_bytes)
    except Exception:
        cap = 64 * 1024 * 1024   # conservative fallback (v7x per-core VMEM)
    # Leave headroom for compiler-internal scratch / double-buffer slack.
    return min(96 * 1024 * 1024, (cap * 5) // 8)


def _pad_nodes(n):
    """Pad node count so the chosen tiles divide it evenly (no 128x128 fallback)."""
    n128 = _round_up(max(n, 1), 128)
    if n128 <= 512:
        return n128
    return _round_up(n, 512)


def _choose_tiles(npad, width, out_bytes):
    """Pick (tm, tk) for streaming the (npad, npad) bf16 adjacency."""
    budget = _vmem_limit_bytes()

    # Row tile: biggest of {512,256,128} dividing npad while keeping >= 2 row
    # tiles so the "parallel" axis can shard across v7x's two TensorCores.
    tm = 128
    for t in (512, 256, 128):
        if npad % t == 0 and npad // t >= 2:
            tm = t
            break

    # Contraction tile over A's columns: aim for ~1-2 MiB of A per grid step.
    tk = 128
    for t in (2048, 1024, 512, 256, 128):
        if npad % t == 0:
            tk = t
            break

    def vmem_use(tm_, tk_):
        return (2 * tm_ * tk_ * 2               # A tiles (bf16, double-buffered)
                + 2 * tk_ * width * 2           # M slabs (bf16, double-buffered)
                + 2 * tm_ * width * out_bytes   # output tiles (double-buffered)
                + tm_ * width * 4               # f32 accumulator scratch
                + 2 * 8 * width * 4)            # bias block (sublane-padded)

    while tk > 128 and vmem_use(tm, tk) > budget:
        tk //= 2
    while tm > 128 and vmem_use(tm, tk) > budget:
        tm //= 2
    return tm, tk


# ----------------------------------------------------------------------------
# Pallas wrapper: out = maybe_relu(A @ M + b), A streamed in (tm, tk) bf16 tiles.
# ----------------------------------------------------------------------------
def adj_propagate(a_bf, m_bf, b_f32, *, apply_relu, out_dtype):
    npad = a_bf.shape[0]
    width = m_bf.shape[1]
    out_bytes = jnp.dtype(out_dtype).itemsize
    tm, tk = _choose_tiles(npad, width, out_bytes)

    kernel = functools.partial(adj_propagate_kernel, apply_relu=apply_relu)

    return pl.pallas_call(
        kernel,
        out_shape=jax.ShapeDtypeStruct((npad, width), out_dtype),
        grid=(npad // tm, npad // tk),
        in_specs=[
            pl.BlockSpec((tm, tk), lambda i, k: (i, k)),      # A row/col tile
            pl.BlockSpec((tk, width), lambda i, k: (k, 0)),   # streamed M slab
            pl.BlockSpec((1, width), lambda i, k: (0, 0)),    # bias row (tiny)
        ],
        out_specs=pl.BlockSpec((tm, width), lambda i, k: (i, 0)),
        scratch_shapes=[pltpu.VMEM((tm, width), jnp.float32)],
        compiler_params=pltpu.CompilerParams(
            dimension_semantics=("parallel", "arbitrary"),
            vmem_limit_bytes=_vmem_limit_bytes(),
        ),
    )(a_bf, m_bf, b_f32)


def gcn_layer(a_bf, x_bf, w_bf, b_f32, *, apply_relu, out_dtype):
    """maybe_relu(A @ X @ W + b), contracting A against the narrower of X / X@W."""
    fpad = x_bf.shape[1]
    opad = w_bf.shape[1]
    if opad <= fpad:
        # A @ (X @ W): project first (tiny N*F*O matmul in XLA), stream width O.
        m = jnp.dot(x_bf, w_bf,
                    preferred_element_type=jnp.float32).astype(jnp.bfloat16)
        return adj_propagate(a_bf, m, b_f32,
                             apply_relu=apply_relu, out_dtype=out_dtype)
    # (A @ X) @ W: stream width F through the kernel, project the small result
    # afterwards (tiny N*F*O matmul in XLA, f32).
    ax = adj_propagate(a_bf, x_bf, jnp.zeros((1, fpad), jnp.float32),
                       apply_relu=False, out_dtype=jnp.float32)
    y = jnp.dot(ax, w_bf.astype(jnp.float32),
                preferred_element_type=jnp.float32) + b_f32
    if apply_relu:
        y = jnp.maximum(y, 0.0)
    return y.astype(out_dtype)


def graph_conv_net(a_norm, x, w1, b1, w2, b2):
    """Full 2-layer GCN forward: pads to lane-dense shapes, runs two tiled
    Pallas adjacency-propagation calls (bf16 operands, f32 accumulation)."""
    n, f_in = x.shape
    hidden = w1.shape[1]
    num_classes = w2.shape[1]

    LANE = 128
    npad = _pad_nodes(n)
    fpad = _round_up(f_in, LANE)
    hpad = _round_up(hidden, LANE)
    cpad = _round_up(num_classes, LANE)

    # Pad + cast in one step (no intermediate padded f32 copy of the N^2 matrix).
    a_bf = jnp.zeros((npad, npad), jnp.bfloat16).at[:n, :n].set(
        a_norm.astype(jnp.bfloat16))
    x_bf = jnp.zeros((npad, fpad), jnp.bfloat16).at[:n, :f_in].set(
        x.astype(jnp.bfloat16))
    w1_bf = jnp.zeros((fpad, hpad), jnp.bfloat16).at[:f_in, :hidden].set(
        w1.astype(jnp.bfloat16))
    b1_p = jnp.zeros((1, hpad), jnp.float32).at[:, :hidden].set(b1.reshape(1, -1))
    w2_bf = jnp.zeros((hpad, cpad), jnp.bfloat16).at[:hidden, :num_classes].set(
        w2.astype(jnp.bfloat16))
    b2_p = jnp.zeros((1, cpad), jnp.float32).at[:, :num_classes].set(b2.reshape(1, -1))

    # Layer 1: relu(A @ (X @ W1) + b1); intermediate kept bf16 in HBM.
    h_bf = gcn_layer(a_bf, x_bf, w1_bf, b1_p,
                     apply_relu=True, out_dtype=jnp.bfloat16)
    # Layer 2: A @ (H @ W2) + b2, f32 output.
    out_p = gcn_layer(a_bf, h_bf, w2_bf, b2_p,
                      apply_relu=False, out_dtype=jnp.float32)

    return out_p[:n, :num_classes]


# ----------------------------------------------------------------------------
# Glue (plain JAX): dense D^{-1/2}(A + I)D^{-1/2}, matching PyG gcn_norm.
# Emits bf16 directly (deg / rsqrt computed in f32).
# ----------------------------------------------------------------------------
def build_normalized_adjacency(edge_index, num_nodes, dtype=jnp.bfloat16):
    src, dst = edge_index[0], edge_index[1]
    a_hat = jnp.zeros((num_nodes, num_nodes), jnp.float32)
    a_hat = a_hat.at[dst, src].add(1.0)                      # messages src -> dst
    a_hat = a_hat + jnp.eye(num_nodes, dtype=jnp.float32)    # self loops
    deg = jnp.sum(a_hat, axis=1)
    dinv = jnp.where(deg > 0, jax.lax.rsqrt(deg), 0.0)
    return (dinv[:, None] * a_hat * dinv[None, :]).astype(dtype)


def glorot(key, shape):
    fan_in, fan_out = shape
    limit = jnp.sqrt(6.0 / (fan_in + fan_out))
    return jax.random.uniform(key, shape, jnp.float32, -limit, limit)


def _reference(a_norm, x, w1, b1, w2, b2):
    a = a_norm.astype(jnp.float32)
    h = jnp.maximum(a @ (x @ w1) + b1[None, :], 0.0)
    return a @ (h @ w2) + b2[None, :]


def _ring_plus_chords(num_nodes, chord_stride, chord_mul, chord_add):
    ring_src = jnp.arange(num_nodes, dtype=jnp.int32)
    ring_dst = (ring_src + 1) % num_nodes
    chord_src = jnp.arange(0, num_nodes, chord_stride, dtype=jnp.int32)
    chord_dst = (chord_src * chord_mul + chord_add) % num_nodes
    src = jnp.concatenate([ring_src, ring_dst, chord_src, chord_dst])
    dst = jnp.concatenate([ring_dst, ring_src, chord_dst, chord_src])
    return jnp.stack([src, dst], axis=0)


def _run_case(key, num_nodes, num_node_features, hidden, num_classes,
              chord_stride, chord_mul, chord_add):
    kx, kw1, kb1, kw2, kb2 = jax.random.split(key, 5)
    x = jax.random.normal(kx, (num_nodes, num_node_features), jnp.float32)
    edge_index = _ring_plus_chords(num_nodes, chord_stride, chord_mul, chord_add)

    w1 = glorot(kw1, (num_node_features, hidden))
    b1 = 0.1 * jax.random.normal(kb1, (hidden,), jnp.float32)
    w2 = glorot(kw2, (hidden, num_classes))
    b2 = 0.1 * jax.random.normal(kb2, (num_classes,), jnp.float32)

    a_norm = build_normalized_adjacency(edge_index, num_nodes)

    out = graph_conv_net(a_norm, x, w1, b1, w2, b2)
    out = jax.block_until_ready(out)

    out_ref = _reference(a_norm, x, w1, b1, w2, b2)
    assert out.shape == (num_nodes, num_classes)
    err = float(jnp.max(jnp.abs(out - out_ref)))
    assert jnp.allclose(out, out_ref, atol=5e-2, rtol=5e-2), err
    return err


if __name__ == "__main__":
    key = jax.random.PRNGKey(0)
    k1, k2 = jax.random.split(key, 2)

    # Case 1: shapes matching the module spec (hidden=16); tiny graph, grid (1,1).
    _run_case(k1, num_nodes=16, num_node_features=8, hidden=16, num_classes=4,
              chord_stride=4, chord_mul=7, chord_add=3)

    # Case 2: larger graph (npad=384 -> multi-tile grid, exercises the k-loop
    # accumulate / @pl.when revisit path and the (A@X)@W ordering branch since
    # hidden > num_node_features here).
    _run_case(k2, num_nodes=300, num_node_features=8, hidden=200, num_classes=5,
              chord_stride=6, chord_mul=7, chord_add=3)

    print("KERNEL_OK")
</pallas_src>

<mosaic_0001>
module attributes {stable_mosaic.version = 11 : i64} {
  func.func @adj_propagate_kernel(%arg0: i32, %arg1: i32, %arg2: memref<128x128xbf16, #tpu.memory_space<vmem>>, %arg3: memref<128x128xbf16, #tpu.memory_space<vmem>>, %arg4: memref<1x128xf32, #tpu.memory_space<vmem>>, %arg5: memref<128x128xbf16, #tpu.memory_space<vmem>>, %arg6: memref<128x128xf32, #tpu.memory_space<vmem>>) attributes {dimension_semantics = [#tpu.dimension_semantics<parallel>, #tpu.dimension_semantics<arbitrary>], iteration_bounds = array<i64: 1, 1>, scalar_prefetch = 0 : i64, scratch_operands = 1 : i64, tpu.core_type = #tpu.core_type<tc>, window_params = [{transform_indices = @transform_0, window_bounds = array<i64: 128, 128>}, {transform_indices = @transform_1, window_bounds = array<i64: 128, 128>}, {pipeline_mode = #tpu.pipeline_mode<synchronous>, transform_indices = @transform_2, window_bounds = array<i64: 1, 128>}, {transform_indices = @transform_3, window_bounds = array<i64: 128, 128>}]} {
    %c0_i32 = arith.constant 0 : i32
    %0 = arith.cmpi eq, %arg1, %c0_i32 : i32
    %1 = arith.extui %0 : i1 to i32
    %c0_i32_0 = arith.constant 0 : i32
    %2 = arith.cmpi ne, %1, %c0_i32_0 : i32
    scf.if %2 {
      %cst_10 = arith.constant 0.000000e+00 : f32
      %12 = vector.broadcast %cst_10 : f32 to vector<128x128xf32>
      %c0_11 = arith.constant 0 : index
      %c0_12 = arith.constant 0 : index
      %13 = vector.load %arg6[%c0_11, %c0_12] : memref<128x128xf32, #tpu.memory_space<vmem>>, vector<128x128xf32>
      tpu.vector_store %arg6[%c0_11, %c0_12], %12 {strides = array<i32>} : memref<128x128xf32, #tpu.memory_space<vmem>>, vector<128x128xf32>,
    } else {
    }
    %c0 = arith.constant 0 : index
    %c0_1 = arith.constant 0 : index
    %3 = vector.load %arg6[%c0, %c0_1] : memref<128x128xf32, #tpu.memory_space<vmem>>, vector<128x128xf32>
    %c0_2 = arith.constant 0 : index
    %c0_3 = arith.constant 0 : index
    %4 = vector.load %arg2[%c0_2, %c0_3] : memref<128x128xbf16, #tpu.memory_space<vmem>>, vector<128x128xbf16>
    %c0_4 = arith.constant 0 : index
    %c0_5 = arith.constant 0 : index
    %5 = vector.load %arg3[%c0_4, %c0_5] : memref<128x128xbf16, #tpu.memory_space<vmem>>, vector<128x128xbf16>
    %cst = arith.constant dense<0.000000e+00> : vector<128x128xf32>
    %6 = tpu.matmul %4, %5, %cst {dimension_numbers = #tpu.dot_dimension_numbers<[1], [0], [0], [1], [0, 0, 1, 1], [], []>} : vector<128x128xbf16>, vector<128x128xbf16>, vector<128x128xf32> -> vector<128x128xf32>
    %7 = arith.addf %3, %6 : vector<128x128xf32>
    %c0_6 = arith.constant 0 : index
    %c0_7 = arith.constant 0 : index
    %8 = vector.load %arg6[%c0_6, %c0_7] : memref<128x128xf32, #tpu.memory_space<vmem>>, vector<128x128xf32>
    tpu.vector_store %arg6[%c0_6, %c0_7], %7 {strides = array<i32>} : memref<128x128xf32, #tpu.memory_space<vmem>>, vector<128x128xf32>,
    %c0_i32_8 = arith.constant 0 : i32
    %9 = arith.cmpi eq, %arg1, %c0_i32_8 : i32
    %10 = arith.extui %9 : i1 to i32
    %c0_i32_9 = arith.constant 0 : i32
    %11 = arith.cmpi ne, %10, %c0_i32_9 : i32
    scf.if %11 {
      %c0_10 = arith.constant 0 : index
      %c0_11 = arith.constant 0 : index
      %12 = vector.load %arg6[%c0_10, %c0_11] : memref<128x128xf32, #tpu.memory_space<vmem>>, vector<128x128xf32>
      %c0_12 = arith.constant 0 : index
      %c0_13 = arith.constant 0 : index
      %13 = vector.load %arg4[%c0_12, %c0_13] : memref<1x128xf32, #tpu.memory_space<vmem>>, vector<1x128xf32>
      %14 = vector.broadcast %13 : vector<1x128xf32> to vector<128x128xf32>
      %15 = arith.addf %12, %14 : vector<128x128xf32>
      %cst_14 = arith.constant 0.000000e+00 : f32
      %16 = vector.broadcast %cst_14 : f32 to vector<128x128xf32>
      %17 = arith.maximumf %15, %16 : vector<128x128xf32>
      %18 = arith.truncf %17 : vector<128x128xf32> to vector<128x128xbf16>
      %c0_15 = arith.constant 0 : index
      %c0_16 = arith.constant 0 : index
      %19 = vector.load %arg5[%c0_15, %c0_16] : memref<128x128xbf16, #tpu.memory_space<vmem>>, vector<128x128xbf16>
      tpu.vector_store %arg5[%c0_15, %c0_16], %18 {strides = array<i32>} : memref<128x128xbf16, #tpu.memory_space<vmem>>, vector<128x128xbf16>,
    } else {
    }
    return
  }
  func.func @transform_0(%arg0: i32, %arg1: i32) -> (i32, i32) {
    %c0_i32 = arith.constant 0 : i32
    return %arg0, %arg1 : i32, i32
  }
  func.func @transform_1(%arg0: i32, %arg1: i32) -> (i32, i32) {
    %c0_i32 = arith.constant 0 : i32
    %c0_i32_0 = arith.constant 0 : i32
    return %arg1, %c0_i32 : i32, i32
  }
  func.func @transform_2(%arg0: i32, %arg1: i32) -> (i32, i32) {
    %c0_i32 = arith.constant 0 : i32
    %c0_i32_0 = arith.constant 0 : i32
    %c0_i32_1 = arith.constant 0 : i32
    return %c0_i32, %c0_i32_0 : i32, i32
  }
  func.func @transform_3(%arg0: i32, %arg1: i32) -> (i32, i32) {
    %c0_i32 = arith.constant 0 : i32
    %c0_i32_0 = arith.constant 0 : i32
    return %arg0, %c0_i32 : i32, i32
  }
}

</mosaic_0001>

<bundles_post_ra>
// kernel: tpu_custom_call.1
= control target key start
LH: loop header
LB: loop body
LE: loop exit
PB: predicated region body
PF: predicated region fallthrough
CT: control target
= control target key end

     0   :  { %8 = vsyncpa [#allocation4], 0  ;;  %s680_s0 = inlined_call_operand.hbm [shape: bf16[128,128], index: 0, kind: input, shape index: {}]   ;;  %s681_s1 = inlined_call_operand.hbm [shape: bf16[128,128], index: 1, kind: input, shape index: {}]   ;;  %s682_s2 = inlined_call_operand.vmem [shape: f32[1,128], index: 2, kind: input, shape index: {}]   ;;  %s683_s3 = inlined_call_operand.hbm [shape: bf16[128,128], index: 3, kind: output, shape index: {}]  }
   0x1   :  { %9 = vsyncpa [#allocation7], 0 }
   0x2   :  { %10 = vsyncpa [#allocation5], 0  ;;  %s15_s14 = sshll.u32 %s680_s0, 4  ;;  %s634_s15 = smov [#allocation3]   ;;  %s16_s14 = int_to_ptr.hbm [resolvable:$true] %s15_s14 }
   0x3   :  { %s17_s16 = sshll.u32 %s634_s15, 4  ;;  %s28_s19 = sshll.u32 %s681_s1, 4  ;;  %s18_s16 = int_to_ptr.vmem [resolvable:$true] %s17_s16  ;;  %s29_s19 = int_to_ptr.hbm [resolvable:$true] %s28_s19 }
   0x4   :  { %s635_s20 = smov 64   ;;  %s636_s21 = smov 4  }
   0x5   :  { %23 = dma.hbm_to_vmem [thread:$0]  %s16_s14, 1024, %s18_s16, [#allocation4], %s635_s20, %s635_s20, %s636_s21  }
   0x6   :  { %s637_s22 = smov [#allocation6]  }
   0x7   :  { %s30_s23 = sshll.u32 %s637_s22, 4  ;;  %s31_s23 = int_to_ptr.vmem [resolvable:$true] %s30_s23 }
   0x8   :  { %36 = dma.hbm_to_vmem [thread:$0]  %s29_s19, 1024, %s31_s23, [#allocation7], %s635_s20, %s635_s20, %s636_s21  }
   0x9   :  { %628 = dma.done.wait [#allocation4], 1024  }
   0xa   :  { %629 = vsyncadd [#allocation4], 4294966272 }
   0xb   :  { %630 = dma.done.wait [#allocation7], 1024  }
   0xc   :  { %631 = vsyncadd [#allocation7], 4294966272  ;;  %v478_v0 = vld [vmem:[#allocation6 + $0x38] sm:$0xff]  ;;  %v477_v1 = vld [vmem:[#allocation6 + $0x30] sm:$0xff]  ;;  %s385_s27 = sshll.u32 %s683_s3, 4  ;;  %s386_s27 = int_to_ptr.hbm [resolvable:$true] %s385_s27 }
   0xd   :  { %211 = vmatpush.bf16.msra.mxu0 %v478_v0  ;;  %526 = vmatpush.bf16.msra.mxu1 %v478_v0  ;;  %v476_v2 = vld [vmem:[#allocation6 + $0x28] sm:$0xff]  ;;  %v475_v3 = vld [vmem:[#allocation6 + $0x20] sm:$0xff]  ;;  %v474_v4 = vld [vmem:[#allocation6 + $0x18] sm:$0xff] }
   0xe   :  { %527 = vmatpush.bf16.msra.mxu2 %v478_v0  ;;  %528 = vmatpush.bf16.msra.mxu3 %v478_v0  ;;  %v473_v5 = vld [vmem:[#allocation6 + $0x10] sm:$0xff]  ;;  %v472_v6 = vld [vmem:[#allocation6 + $0x8] sm:$0xff]  ;;  %v471_v7 = vld [vmem:[#allocation6] sm:$0xff] }
   0xf   :  { %v463_v8 = vld [vmem:[#allocation3] sm:$0xff]  ;;  %v465_v9 = vld [vmem:[#allocation3 + $0x10] sm:$0xff]  ;;  %v464_v12 = vld [vmem:[#allocation3 + $0x8] sm:$0xff] }
  0x10   :  { %v467_v10 = vld [vmem:[#allocation3 + $0x20] sm:$0xff]  ;;  %v469_v11 = vld [vmem:[#allocation3 + $0x30] sm:$0xff]  ;;  %v466_v13 = vld [vmem:[#allocation3 + $0x18] sm:$0xff] }
  0x11   :  { %212 = vmatpush.bf16.msra.mxu0 %v477_v1  ;;  %529 = vmatpush.bf16.msra.mxu1 %v477_v1  ;;  %v468_v14 = vld [vmem:[#allocation3 + $0x28] sm:$0xff]  ;;  %v470_v15 = vld [vmem:[#allocation3 + $0x38] sm:$0xff]  ;;  %v555_v18 = vld [vmem:[%s682_s2] ss:$0 sm:$0xff]  ;;  %s638_s2 = smov [#allocation8]  }
  0x12   :  { %530 = vmatpush.bf16.msra.mxu2 %v477_v1  ;;  %531 = vmatpush.bf16.msra.mxu3 %v477_v1  ;;  %s383_s24 = sshll.u32 %s638_s2, 4  ;;  %s384_s24 = int_to_ptr.vmem [resolvable:$true] %s383_s24 }
  0x15   :  { %213 = vmatpush.bf16.msra.mxu0 %v476_v2  ;;  %532 = vmatpush.bf16.msra.mxu1 %v476_v2 }
  0x16   :  { %533 = vmatpush.bf16.msra.mxu2 %v476_v2  ;;  %534 = vmatpush.bf16.msra.mxu3 %v476_v2 }
  0x19   :  { %214 = vmatpush.bf16.msra.mxu0 %v475_v3  ;;  %535 = vmatpush.bf16.msra.mxu1 %v475_v3 }
  0x1a   :  { %536 = vmatpush.bf16.msra.mxu2 %v475_v3  ;;  %537 = vmatpush.bf16.msra.mxu3 %v475_v3 }
  0x1d   :  { %215 = vmatpush.bf16.msra.mxu0 %v474_v4  ;;  %538 = vmatpush.bf16.msra.mxu1 %v474_v4 }
  0x1e   :  { %539 = vmatpush.bf16.msra.mxu2 %v474_v4  ;;  %540 = vmatpush.bf16.msra.mxu3 %v474_v4 }
  0x21   :  { %216 = vmatpush.bf16.msra.mxu0 %v473_v5  ;;  %541 = vmatpush.bf16.msra.mxu1 %v473_v5 }
  0x22   :  { %542 = vmatpush.bf16.msra.mxu2 %v473_v5  ;;  %543 = vmatpush.bf16.msra.mxu3 %v473_v5 }
  0x25   :  { %217 = vmatpush.bf16.msra.mxu0 %v472_v6  ;;  %544 = vmatpush.bf16.msra.mxu1 %v472_v6 }
  0x26   :  { %545 = vmatpush.bf16.msra.mxu2 %v472_v6  ;;  %546 = vmatpush.bf16.msra.mxu3 %v472_v6 }
  0x29   :  { %218 = vmatpush.bf16.msra.mxu0 %v471_v7  ;;  %547 = vmatpush.bf16.msra.mxu1 %v471_v7 }
  0x2a   :  { %548 = vmatpush.bf16.msra.mxu2 %v471_v7  ;;  %549 = vmatpush.bf16.msra.mxu3 %v471_v7 }
  0x2c   :  { %219 = vmatmul.bf16.vlgmr.msra.gmra.mxu0 %v463_v8  ;;  %229 = vmatmul.bf16.vlgmr.msra.gmra.mxu1 %v465_v9 }
  0x2d   :  { %239 = vmatmul.bf16.vlgmr.msra.gmra.mxu2 %v467_v10  ;;  %249 = vmatmul.bf16.vlgmr.msra.gmra.mxu3 %v469_v11 }
  0x3c   :  { %224 = vmatmul.bf16.gmra.mxu0 %v464_v12  ;;  %234 = vmatmul.bf16.gmra.mxu1 %v466_v13 }
  0x3d   :  { %244 = vmatmul.bf16.gmra.mxu2 %v468_v14  ;;  %254 = vmatmul.bf16.gmra.mxu3 %v470_v15 }
  0xa9   :  { %v220_v16 = vpop.f32.mrf.mxu0  ;;  %v230_v17 = vpop.f32.mrf.mxu1 }
  0xaa   :  { %v315_v19 = vadd.f32 %v555_v18, %v220_v16  ;;  %v319_v20 = vadd.f32 %v555_v18, %v230_v17 }
  0xac   :  { %v331_v27 = vmax.f32 %v315_v19, 0.0  ;;  %v335_v28 = vmax.f32 %v319_v20, 0.0 }
  0xb0   :  { %v240_v21 = vpop.f32.mrf.mxu2  ;;  %v250_v22 = vpop.f32.mrf.mxu3 }
  0xb1   :  { %v222_v23 = vpop.f32.mrf.mxu0  ;;  %v232_v24 = vpop.f32.mrf.mxu1  ;;  %v323_v33 = vadd.f32 %v555_v18, %v240_v21  ;;  %v327_v34 = vadd.f32 %v555_v18, %v250_v22 }
  0xb2   :  { %v316_v25 = vadd.f32 %v555_v18, %v222_v23  ;;  %v320_v26 = vadd.f32 %v555_v18, %v232_v24 }
  0xb3   :  { %v339_v41 = vmax.f32 %v323_v33, 0.0  ;;  %v343_v42 = vmax.f32 %v327_v34, 0.0 }
  0xb4   :  { %v332_v29 = vmax.f32 %v316_v25, 0.0  ;;  %v336_v30 = vmax.f32 %v320_v26, 0.0 }
  0xb6   :  { %v482_v31 = vpack.c.bf16 %v332_v29, %v331_v27  ;;  %v492_v32 = vpack.c.bf16 %v336_v30, %v335_v28 }
  0xb8   :  { %483 = vst [vmem:[#allocation8] sm:$0xff] %v482_v31   ;;  %v242_v35 = vpop.f32.mrf.mxu2  ;;  %v252_v36 = vpop.f32.mrf.mxu3 }
  0xb9   :  { %520 = vst [vmem:[#allocation8 + $0x10] sm:$0xff] %v492_v32   ;;  %v324_v37 = vadd.f32 %v555_v18, %v242_v35  ;;  %v328_v38 = vadd.f32 %v555_v18, %v252_v36  ;;  %v225_v39 = vpop.f32.mrf.mxu0  ;;  %v235_v40 = vpop.f32.mrf.mxu1 }
  0xba   :  { %v317_v47 = vadd.f32 %v555_v18, %v225_v39  ;;  %v321_v48 = vadd.f32 %v555_v18, %v235_v40 }
  0xbb   :  { %v340_v43 = vmax.f32 %v324_v37, 0.0  ;;  %v344_v44 = vmax.f32 %v328_v38, 0.0 }
  0xbc   :  { %v333_v55 = vmax.f32 %v317_v47, 0.0  ;;  %v337_v56 = vmax.f32 %v321_v48, 0.0 }
  0xbd   :  { %v502_v45 = vpack.c.bf16 %v340_v43, %v339_v41  ;;  %v512_v46 = vpack.c.bf16 %v344_v44, %v343_v42 }
  0xbf   :  { %522 = vst [vmem:[#allocation8 + $0x20] sm:$0xff] %v502_v45  }
  0xc0   :  { %524 = vst [vmem:[#allocation8 + $0x30] sm:$0xff] %v512_v46   ;;  %v245_v49 = vpop.f32.mrf.mxu2  ;;  %v255_v50 = vpop.f32.mrf.mxu3 }
  0xc1   :  { %v227_v51 = vpop.f32.mrf.mxu0  ;;  %v237_v52 = vpop.f32.mrf.mxu1  ;;  %v325_v61 = vadd.f32 %v555_v18, %v245_v49  ;;  %v329_v62 = vadd.f32 %v555_v18, %v255_v50 }
  0xc2   :  { %v318_v53 = vadd.f32 %v555_v18, %v227_v51  ;;  %v322_v54 = vadd.f32 %v555_v18, %v237_v52 }
  0xc3   :  { %v341_v3 = vmax.f32 %v325_v61, 0.0  ;;  %v345_v4 = vmax.f32 %v329_v62, 0.0 }
  0xc4   :  { %v334_v57 = vmax.f32 %v318_v53, 0.0  ;;  %v338_v58 = vmax.f32 %v322_v54, 0.0 }
  0xc6   :  { %v487_v59 = vpack.c.bf16 %v334_v57, %v333_v55  ;;  %v497_v60 = vpack.c.bf16 %v338_v58, %v337_v56 }
  0xc8   :  { %519 = vst [vmem:[#allocation8 + $0x8] sm:$0xff] %v487_v59   ;;  %v247_v63 = vpop.f32.mrf.mxu2  ;;  %v257_v0 = vpop.f32.mrf.mxu3 }
  0xc9   :  { %521 = vst [vmem:[#allocation8 + $0x18] sm:$0xff] %v497_v60   ;;  %v326_v1 = vadd.f32 %v555_v18, %v247_v63  ;;  %v330_v2 = vadd.f32 %v555_v18, %v257_v0 }
  0xcb   :  { %v342_v5 = vmax.f32 %v326_v1, 0.0  ;;  %v346_v6 = vmax.f32 %v330_v2, 0.0 }
  0xcd   :  { %v507_v7 = vpack.c.bf16 %v342_v5, %v341_v3  ;;  %v517_v8 = vpack.c.bf16 %v346_v6, %v345_v4 }
  0xcf   :  { %523 = vst [vmem:[#allocation8 + $0x28] sm:$0xff] %v507_v7  }
  0xd0   :  { %525 = vst [vmem:[#allocation8 + $0x38] sm:$0xff] %v517_v8  }
  0xd1   :  { %391 = dma.vmem_to_hbm [thread:$0]  %s384_s24, 1024, %s386_s27, [#allocation5], %s635_s20, %s635_s20, %s636_s21  }
  0xd2   :  { %632 = dma.done.wait [#allocation5], 1024  }
  0xd3   :  { %633 = vsyncadd [#allocation5], 4294966272 }
  0xd4   :  { %396 = vsyncpa [#allocation4], 1 }
  0xd5   :  { %397 = vsyncpa [#allocation7], 1 }
  0xd6   :  { %398 = vsyncpa [#allocation5], 1 }

</bundles_post_ra>
